<compile_context>
chip_gen: v6e
topology: v6e:2x2x1
jax: 0.10.0
libtpu: 0.0.40
codegen_flags: <defaults>
</compile_context>

<pallas_src>
import functools
import math

import jax
import jax.numpy as jnp
import numpy as np
from jax.experimental import pallas as pl
from jax.experimental.pallas import tpu as pltpu


# ----------------------------- Pallas kernel ------------------------------

def _fused_attn_layer_kernel(q_in_ref, k_in_ref, v_in_ref,
                             wq_ref, wk_ref, wv_ref, wo_ref,
                             bq_ref, bk_ref, bv_ref, bo_ref,
                             o_ref, *, n_heads, scale):
    # Blocks (per grid step = one batch element):
    #   q_in: (1, L, C)   k_in/v_in: (1, S, C)   weights: (C, C)  biases: (1, C)
    #   o:    (1, L, C)
    xq = q_in_ref[0]                  # (L, C)
    xk = k_in_ref[0]                  # (S, C)
    xv = v_in_ref[0]                  # (S, C)

    L, C = xq.shape
    S = xk.shape[0]
    H = n_heads
    D = C // H

    # Fused projections on the MXU with f32 accumulation (lane-dense (., C)).
    q = jnp.dot(xq, wq_ref[...], preferred_element_type=jnp.float32) + bq_ref[...]
    k = jnp.dot(xk, wk_ref[...], preferred_element_type=jnp.float32) + bk_ref[...]
    v = jnp.dot(xv, wv_ref[...], preferred_element_type=jnp.float32) + bv_ref[...]

    # 1/sqrt(D) folded onto q (L*C multiplies) instead of the (H, L, S) scores.
    q = q * scale

    # Per-head attention: H is small and static; head slices are static
    # lane-dim slices, no reshape/transpose needed.  The output projection is
    # accumulated per head (ctx_h @ wo[h*D:(h+1)*D, :]) so the only store is a
    # single lane-dense (L, C) block.
    acc = jnp.zeros((L, C), jnp.float32)
    for h in range(H):
        qh = q[:, h * D:(h + 1) * D]                      # (L, D)
        kh = k[:, h * D:(h + 1) * D]                      # (S, D)
        vh = v[:, h * D:(h + 1) * D]                      # (S, D)

        # Contract last dims directly (no explicit k.T / XLU transpose).
        s = jax.lax.dot_general(qh, kh, (((1,), (1,)), ((), ())),
                                preferred_element_type=jnp.float32)   # (L, S)

        m = jnp.max(s, axis=-1, keepdims=True)
        p = jnp.exp(s - m)
        denom = jnp.sum(p, axis=-1, keepdims=True)

        ch = jnp.dot(p, vh, preferred_element_type=jnp.float32)       # (L, D)
        # Softmax normalization folded AFTER the PV matmul: L*D multiplies
        # with an EUP reciprocal instead of L*S divides on the score tile.
        ch = ch * pl.reciprocal(denom, approx=False)

        acc = acc + jnp.dot(ch, wo_ref[h * D:(h + 1) * D, :],
                            preferred_element_type=jnp.float32)

    o_ref[0] = (acc + bo_ref[...]).astype(o_ref.dtype)


# --------------------------- AttentionLayer port ---------------------------

class AttentionLayerPallas:
    """Pallas port of AttentionLayer(hidden_dim, n_heads) with ProbAttention(False, factor=5)."""

    def __init__(self, hidden_dim, n_heads, key):
        self.hidden_dim = hidden_dim
        self.n_heads = n_heads
        self.head_dim = hidden_dim // n_heads
        self.factor = 5

        def init_linear(k, fan_in, fan_out):
            kw, kb = jax.random.split(k)
            bound = 1.0 / math.sqrt(fan_in)
            w = jax.random.uniform(kw, (fan_in, fan_out), jnp.float32, -bound, bound)
            b = jax.random.uniform(kb, (fan_out,), jnp.float32, -bound, bound)
            return w, b

        k1, k2, k3, k4 = jax.random.split(key, 4)
        self.wq, self.bq = init_linear(k1, hidden_dim, hidden_dim)
        self.wk, self.bk = init_linear(k2, hidden_dim, hidden_dim)
        self.wv, self.bv = init_linear(k3, hidden_dim, hidden_dim)
        self.wo, self.bo = init_linear(k4, hidden_dim, hidden_dim)

    def __call__(self, queries, keys, values, attn_mask=None):
        B, L, C = queries.shape
        _, S, _ = keys.shape
        H = self.n_heads
        D = self.head_dim

        # ProbAttention collapses to full attention only when all queries are kept.
        u = self.factor * int(np.ceil(np.log(L)))
        U_part = self.factor * int(np.ceil(np.log(S)))
        assert u >= L and U_part >= S, (
            "sparse ProbAttention sampling path not implemented for these shapes"
        )
        # attn_mask is unused: mask_flag=False in the reference module.

        kern = functools.partial(
            _fused_attn_layer_kernel, n_heads=H, scale=1.0 / math.sqrt(D))

        # Advisory cost hint so XLA schedules the fused call sensibly.
        proj_flops = 2 * B * (L + 2 * S + L) * C * C
        attn_flops = 2 * B * H * (L * S * D + L * S * D)
        bytes_accessed = 4 * (2 * B * L * C + 2 * B * S * C + 4 * C * C + 4 * C)
        cost = pl.CostEstimate(flops=proj_flops + attn_flops,
                               transcendentals=B * H * L * S,
                               bytes_accessed=bytes_accessed)

        out = pl.pallas_call(
            kern,
            out_shape=jax.ShapeDtypeStruct((B, L, C), queries.dtype),
            grid=(B,),
            in_specs=[
                pl.BlockSpec((1, L, C), lambda b: (b, 0, 0)),   # queries
                pl.BlockSpec((1, S, C), lambda b: (b, 0, 0)),   # keys
                pl.BlockSpec((1, S, C), lambda b: (b, 0, 0)),   # values
                pl.BlockSpec((C, C), lambda b: (0, 0)),         # wq
                pl.BlockSpec((C, C), lambda b: (0, 0)),         # wk
                pl.BlockSpec((C, C), lambda b: (0, 0)),         # wv
                pl.BlockSpec((C, C), lambda b: (0, 0)),         # wo
                pl.BlockSpec((1, C), lambda b: (0, 0)),         # bq
                pl.BlockSpec((1, C), lambda b: (0, 0)),         # bk
                pl.BlockSpec((1, C), lambda b: (0, 0)),         # bv
                pl.BlockSpec((1, C), lambda b: (0, 0)),         # bo
            ],
            out_specs=pl.BlockSpec((1, L, C), lambda b: (b, 0, 0)),
            compiler_params=pltpu.CompilerParams(
                dimension_semantics=("parallel",),
                vmem_limit_bytes=32 * 1024 * 1024,
            ),
            cost_estimate=cost,
        )(
            queries, keys, values,
            self.wq, self.wk, self.wv, self.wo,
            self.bq.reshape(1, C), self.bk.reshape(1, C),
            self.bv.reshape(1, C), self.bo.reshape(1, C),
        )
        return out, None  # output_attention=False


# --------------------------------- main ---------------------------------

def _reference_forward(layer, queries, keys, values):
    """Pure-JAX reference of the original module math, for a sanity check."""
    B, L, C = queries.shape
    _, S, _ = keys.shape
    H, D = layer.n_heads, layer.head_dim
    q = (queries.reshape(B * L, C) @ layer.wq + layer.bq).reshape(B, L, H, D)
    k = (keys.reshape(B * S, C) @ layer.wk + layer.bk).reshape(B, S, H, D)
    v = (values.reshape(B * S, C) @ layer.wv + layer.bv).reshape(B, S, H, D)
    q, k, v = (t.transpose(0, 2, 1, 3) for t in (q, k, v))            # (B,H,L,D)
    s = jnp.einsum("bhld,bhsd->bhls", q, k) / math.sqrt(D)
    attn = jax.nn.softmax(s, axis=-1)
    ctx = jnp.einsum("bhls,bhsd->bhld", attn, v)
    ctx = ctx.transpose(0, 2, 1, 3).reshape(B * L, H * D)
    return (ctx @ layer.wo + layer.bo).reshape(B, L, C)


if __name__ == "__main__":
    B, L, S, hidden_dim, n_heads = 2, 8, 8, 32, 4

    key = jax.random.PRNGKey(0)
    k_layer, kq, kk, kv = jax.random.split(key, 4)

    layer = AttentionLayerPallas(hidden_dim, n_heads, k_layer)

    queries = jax.random.normal(kq, (B, L, hidden_dim), jnp.float32)
    keys = jax.random.normal(kk, (B, S, hidden_dim), jnp.float32)
    values = jax.random.normal(kv, (B, S, hidden_dim), jnp.float32)

    out, attn = layer(queries, keys, values, attn_mask=None)
    out = jax.block_until_ready(out)

    ref = _reference_forward(layer, queries, keys, values)
    np.testing.assert_allclose(np.asarray(out), np.asarray(ref), rtol=1e-4, atol=1e-5)

    print("KERNEL_OK")
</pallas_src>

<mosaic_0001>
module attributes {stable_mosaic.version = 11 : i64} {
  func.func @_fused_attn_layer_kernel(%arg0: i32, %arg1: memref<1x8x32xf32, #tpu.memory_space<vmem>>, %arg2: memref<1x8x32xf32, #tpu.memory_space<vmem>>, %arg3: memref<1x8x32xf32, #tpu.memory_space<vmem>>, %arg4: memref<32x32xf32, #tpu.memory_space<vmem>>, %arg5: memref<32x32xf32, #tpu.memory_space<vmem>>, %arg6: memref<32x32xf32, #tpu.memory_space<vmem>>, %arg7: memref<32x32xf32, #tpu.memory_space<vmem>>, %arg8: memref<1x32xf32, #tpu.memory_space<vmem>>, %arg9: memref<1x32xf32, #tpu.memory_space<vmem>>, %arg10: memref<1x32xf32, #tpu.memory_space<vmem>>, %arg11: memref<1x32xf32, #tpu.memory_space<vmem>>, %arg12: memref<1x8x32xf32, #tpu.memory_space<vmem>>) attributes {dimension_semantics = [#tpu.dimension_semantics<parallel>], iteration_bounds = array<i64: 2>, scalar_prefetch = 0 : i64, scratch_operands = 0 : i64, tpu.core_type = #tpu.core_type<tc>, window_params = [{transform_indices = @transform_0, window_bounds = array<i64: 1, 8, 32>}, {transform_indices = @transform_1, window_bounds = array<i64: 1, 8, 32>}, {transform_indices = @transform_2, window_bounds = array<i64: 1, 8, 32>}, {pipeline_mode = #tpu.pipeline_mode<synchronous>, transform_indices = @transform_3, window_bounds = array<i64: 32, 32>}, {pipeline_mode = #tpu.pipeline_mode<synchronous>, transform_indices = @transform_4, window_bounds = array<i64: 32, 32>}, {pipeline_mode = #tpu.pipeline_mode<synchronous>, transform_indices = @transform_5, window_bounds = array<i64: 32, 32>}, {pipeline_mode = #tpu.pipeline_mode<synchronous>, transform_indices = @transform_6, window_bounds = array<i64: 32, 32>}, {pipeline_mode = #tpu.pipeline_mode<synchronous>, transform_indices = @transform_7, window_bounds = array<i64: 1, 32>}, {pipeline_mode = #tpu.pipeline_mode<synchronous>, transform_indices = @transform_8, window_bounds = array<i64: 1, 32>}, {pipeline_mode = #tpu.pipeline_mode<synchronous>, transform_indices = @transform_9, window_bounds = array<i64: 1, 32>}, {pipeline_mode = #tpu.pipeline_mode<synchronous>, transform_indices = @transform_10, window_bounds = array<i64: 1, 32>}, {transform_indices = @transform_11, window_bounds = array<i64: 1, 8, 32>}]} {
    %c0 = arith.constant 0 : index
    %c0_0 = arith.constant 0 : index
    %c0_1 = arith.constant 0 : index
    %0 = vector.load %arg1[%c0, %c0_0, %c0_1] : memref<1x8x32xf32, #tpu.memory_space<vmem>>, vector<1x8x32xf32>
    %1 = vector.shape_cast %0 : vector<1x8x32xf32> to vector<8x32xf32>
    %c0_2 = arith.constant 0 : index
    %c0_3 = arith.constant 0 : index
    %c0_4 = arith.constant 0 : index
    %2 = vector.load %arg2[%c0_2, %c0_3, %c0_4] : memref<1x8x32xf32, #tpu.memory_space<vmem>>, vector<1x8x32xf32>
    %3 = vector.shape_cast %2 : vector<1x8x32xf32> to vector<8x32xf32>
    %c0_5 = arith.constant 0 : index
    %c0_6 = arith.constant 0 : index
    %c0_7 = arith.constant 0 : index
    %4 = vector.load %arg3[%c0_5, %c0_6, %c0_7] : memref<1x8x32xf32, #tpu.memory_space<vmem>>, vector<1x8x32xf32>
    %5 = vector.shape_cast %4 : vector<1x8x32xf32> to vector<8x32xf32>
    %c0_8 = arith.constant 0 : index
    %c0_9 = arith.constant 0 : index
    %6 = vector.load %arg4[%c0_8, %c0_9] : memref<32x32xf32, #tpu.memory_space<vmem>>, vector<32x32xf32>
    %cst = arith.constant dense<0.000000e+00> : vector<8x32xf32>
    %7 = tpu.matmul %1, %6, %cst {dimension_numbers = #tpu.dot_dimension_numbers<[1], [0], [0], [1], [0, 0, 1, 1], [], []>} : vector<8x32xf32>, vector<32x32xf32>, vector<8x32xf32> -> vector<8x32xf32>
    %c0_10 = arith.constant 0 : index
    %c0_11 = arith.constant 0 : index
    %8 = vector.load %arg8[%c0_10, %c0_11] : memref<1x32xf32, #tpu.memory_space<vmem>>, vector<1x32xf32>
    %9 = vector.broadcast %8 : vector<1x32xf32> to vector<8x32xf32>
    %10 = arith.addf %7, %9 : vector<8x32xf32>
    %c0_12 = arith.constant 0 : index
    %c0_13 = arith.constant 0 : index
    %11 = vector.load %arg5[%c0_12, %c0_13] : memref<32x32xf32, #tpu.memory_space<vmem>>, vector<32x32xf32>
    %cst_14 = arith.constant dense<0.000000e+00> : vector<8x32xf32>
    %12 = tpu.matmul %3, %11, %cst_14 {dimension_numbers = #tpu.dot_dimension_numbers<[1], [0], [0], [1], [0, 0, 1, 1], [], []>} : vector<8x32xf32>, vector<32x32xf32>, vector<8x32xf32> -> vector<8x32xf32>
    %c0_15 = arith.constant 0 : index
    %c0_16 = arith.constant 0 : index
    %13 = vector.load %arg9[%c0_15, %c0_16] : memref<1x32xf32, #tpu.memory_space<vmem>>, vector<1x32xf32>
    %14 = vector.broadcast %13 : vector<1x32xf32> to vector<8x32xf32>
    %15 = arith.addf %12, %14 : vector<8x32xf32>
    %c0_17 = arith.constant 0 : index
    %c0_18 = arith.constant 0 : index
    %16 = vector.load %arg6[%c0_17, %c0_18] : memref<32x32xf32, #tpu.memory_space<vmem>>, vector<32x32xf32>
    %cst_19 = arith.constant dense<0.000000e+00> : vector<8x32xf32>
    %17 = tpu.matmul %5, %16, %cst_19 {dimension_numbers = #tpu.dot_dimension_numbers<[1], [0], [0], [1], [0, 0, 1, 1], [], []>} : vector<8x32xf32>, vector<32x32xf32>, vector<8x32xf32> -> vector<8x32xf32>
    %c0_20 = arith.constant 0 : index
    %c0_21 = arith.constant 0 : index
    %18 = vector.load %arg10[%c0_20, %c0_21] : memref<1x32xf32, #tpu.memory_space<vmem>>, vector<1x32xf32>
    %19 = vector.broadcast %18 : vector<1x32xf32> to vector<8x32xf32>
    %20 = arith.addf %17, %19 : vector<8x32xf32>
    %cst_22 = arith.constant 0.353553385 : f32
    %21 = vector.broadcast %cst_22 : f32 to vector<8x32xf32>
    %22 = arith.mulf %10, %21 : vector<8x32xf32>
    %cst_23 = arith.constant 0.000000e+00 : f32
    %23 = vector.broadcast %cst_23 : f32 to vector<8x32xf32>
    %24 = vector.extract_strided_slice %22 {offsets = [0, 0], sizes = [8, 8], strides = [1, 1]} : vector<8x32xf32> to vector<8x8xf32>
    %25 = vector.extract_strided_slice %15 {offsets = [0, 0], sizes = [8, 8], strides = [1, 1]} : vector<8x32xf32> to vector<8x8xf32>
    %26 = vector.extract_strided_slice %20 {offsets = [0, 0], sizes = [8, 8], strides = [1, 1]} : vector<8x32xf32> to vector<8x8xf32>
    %cst_24 = arith.constant dense<0.000000e+00> : vector<8x8xf32>
    %27 = tpu.matmul %24, %25, %cst_24 {dimension_numbers = #tpu.dot_dimension_numbers<[1], [1], [0], [0], [0, 0, 1, 0], [], []>} : vector<8x8xf32>, vector<8x8xf32>, vector<8x8xf32> -> vector<8x8xf32>
    %cst_25 = arith.constant dense<0xFF800000> : vector<8xf32>
    %28 = vector.multi_reduction <maximumf>, %27, %cst_25 [1] : vector<8x8xf32> to vector<8xf32>
    %29 = vector.shape_cast %28 : vector<8xf32> to vector<8x1xf32>
    %30 = vector.broadcast %29 : vector<8x1xf32> to vector<8x8xf32>
    %31 = arith.subf %27, %30 : vector<8x8xf32>
    %32 = math.exp %31 : vector<8x8xf32>
    %cst_26 = arith.constant dense<0.000000e+00> : vector<8xf32>
    %33 = vector.multi_reduction <add>, %32, %cst_26 [1] : vector<8x8xf32> to vector<8xf32>
    %34 = vector.shape_cast %33 : vector<8xf32> to vector<8x1xf32>
    %cst_27 = arith.constant dense<0.000000e+00> : vector<8x8xf32>
    %35 = tpu.matmul %32, %26, %cst_27 {dimension_numbers = #tpu.dot_dimension_numbers<[1], [0], [0], [1], [0, 0, 1, 1], [], []>} : vector<8x8xf32>, vector<8x8xf32>, vector<8x8xf32> -> vector<8x8xf32>
    %36 = tpu.reciprocal %34 : vector<8x1xf32> -> vector<8x1xf32>
    %37 = vector.broadcast %36 : vector<8x1xf32> to vector<8x8xf32>
    %38 = arith.mulf %35, %37 : vector<8x8xf32>
    %c0_28 = arith.constant 0 : index
    %c0_29 = arith.constant 0 : index
    %39 = vector.load %arg7[%c0_28, %c0_29] : memref<32x32xf32, #tpu.memory_space<vmem>>, vector<8x32xf32>
    %cst_30 = arith.constant dense<0.000000e+00> : vector<8x32xf32>
    %40 = tpu.matmul %38, %39, %cst_30 {dimension_numbers = #tpu.dot_dimension_numbers<[1], [0], [0], [1], [0, 0, 1, 1], [], []>} : vector<8x8xf32>, vector<8x32xf32>, vector<8x32xf32> -> vector<8x32xf32>
    %41 = arith.addf %23, %40 : vector<8x32xf32>
    %42 = vector.extract_strided_slice %22 {offsets = [0, 8], sizes = [8, 8], strides = [1, 1]} : vector<8x32xf32> to vector<8x8xf32>
    %43 = vector.extract_strided_slice %15 {offsets = [0, 8], sizes = [8, 8], strides = [1, 1]} : vector<8x32xf32> to vector<8x8xf32>
    %44 = vector.extract_strided_slice %20 {offsets = [0, 8], sizes = [8, 8], strides = [1, 1]} : vector<8x32xf32> to vector<8x8xf32>
    %cst_31 = arith.constant dense<0.000000e+00> : vector<8x8xf32>
    %45 = tpu.matmul %42, %43, %cst_31 {dimension_numbers = #tpu.dot_dimension_numbers<[1], [1], [0], [0], [0, 0, 1, 0], [], []>} : vector<8x8xf32>, vector<8x8xf32>, vector<8x8xf32> -> vector<8x8xf32>
    %cst_32 = arith.constant dense<0xFF800000> : vector<8xf32>
    %46 = vector.multi_reduction <maximumf>, %45, %cst_32 [1] : vector<8x8xf32> to vector<8xf32>
    %47 = vector.shape_cast %46 : vector<8xf32> to vector<8x1xf32>
    %48 = vector.broadcast %47 : vector<8x1xf32> to vector<8x8xf32>
    %49 = arith.subf %45, %48 : vector<8x8xf32>
    %50 = math.exp %49 : vector<8x8xf32>
    %cst_33 = arith.constant dense<0.000000e+00> : vector<8xf32>
    %51 = vector.multi_reduction <add>, %50, %cst_33 [1] : vector<8x8xf32> to vector<8xf32>
    %52 = vector.shape_cast %51 : vector<8xf32> to vector<8x1xf32>
    %cst_34 = arith.constant dense<0.000000e+00> : vector<8x8xf32>
    %53 = tpu.matmul %50, %44, %cst_34 {dimension_numbers = #tpu.dot_dimension_numbers<[1], [0], [0], [1], [0, 0, 1, 1], [], []>} : vector<8x8xf32>, vector<8x8xf32>, vector<8x8xf32> -> vector<8x8xf32>
    %54 = tpu.reciprocal %52 : vector<8x1xf32> -> vector<8x1xf32>
    %55 = vector.broadcast %54 : vector<8x1xf32> to vector<8x8xf32>
    %56 = arith.mulf %53, %55 : vector<8x8xf32>
    %c8 = arith.constant 8 : index
    %c0_35 = arith.constant 0 : index
    %57 = vector.load %arg7[%c8, %c0_35] : memref<32x32xf32, #tpu.memory_space<vmem>>, vector<8x32xf32>
    %cst_36 = arith.constant dense<0.000000e+00> : vector<8x32xf32>
    %58 = tpu.matmul %56, %57, %cst_36 {dimension_numbers = #tpu.dot_dimension_numbers<[1], [0], [0], [1], [0, 0, 1, 1], [], []>} : vector<8x8xf32>, vector<8x32xf32>, vector<8x32xf32> -> vector<8x32xf32>
    %59 = arith.addf %41, %58 : vector<8x32xf32>
    %60 = vector.extract_strided_slice %22 {offsets = [0, 16], sizes = [8, 8], strides = [1, 1]} : vector<8x32xf32> to vector<8x8xf32>
    %61 = vector.extract_strided_slice %15 {offsets = [0, 16], sizes = [8, 8], strides = [1, 1]} : vector<8x32xf32> to vector<8x8xf32>
    %62 = vector.extract_strided_slice %20 {offsets = [0, 16], sizes = [8, 8], strides = [1, 1]} : vector<8x32xf32> to vector<8x8xf32>
    %cst_37 = arith.constant dense<0.000000e+00> : vector<8x8xf32>
    %63 = tpu.matmul %60, %61, %cst_37 {dimension_numbers = #tpu.dot_dimension_numbers<[1], [1], [0], [0], [0, 0, 1, 0], [], []>} : vector<8x8xf32>, vector<8x8xf32>, vector<8x8xf32> -> vector<8x8xf32>
    %cst_38 = arith.constant dense<0xFF800000> : vector<8xf32>
    %64 = vector.multi_reduction <maximumf>, %63, %cst_38 [1] : vector<8x8xf32> to vector<8xf32>
    %65 = vector.shape_cast %64 : vector<8xf32> to vector<8x1xf32>
    %66 = vector.broadcast %65 : vector<8x1xf32> to vector<8x8xf32>
    %67 = arith.subf %63, %66 : vector<8x8xf32>
    %68 = math.exp %67 : vector<8x8xf32>
    %cst_39 = arith.constant dense<0.000000e+00> : vector<8xf32>
    %69 = vector.multi_reduction <add>, %68, %cst_39 [1] : vector<8x8xf32> to vector<8xf32>
    %70 = vector.shape_cast %69 : vector<8xf32> to vector<8x1xf32>
    %cst_40 = arith.constant dense<0.000000e+00> : vector<8x8xf32>
    %71 = tpu.matmul %68, %62, %cst_40 {dimension_numbers = #tpu.dot_dimension_numbers<[1], [0], [0], [1], [0, 0, 1, 1], [], []>} : vector<8x8xf32>, vector<8x8xf32>, vector<8x8xf32> -> vector<8x8xf32>
    %72 = tpu.reciprocal %70 : vector<8x1xf32> -> vector<8x1xf32>
    %73 = vector.broadcast %72 : vector<8x1xf32> to vector<8x8xf32>
    %74 = arith.mulf %71, %73 : vector<8x8xf32>
    %c16 = arith.constant 16 : index
    %c0_41 = arith.constant 0 : index
    %75 = vector.load %arg7[%c16, %c0_41] : memref<32x32xf32, #tpu.memory_space<vmem>>, vector<8x32xf32>
    %cst_42 = arith.constant dense<0.000000e+00> : vector<8x32xf32>
    %76 = tpu.matmul %74, %75, %cst_42 {dimension_numbers = #tpu.dot_dimension_numbers<[1], [0], [0], [1], [0, 0, 1, 1], [], []>} : vector<8x8xf32>, vector<8x32xf32>, vector<8x32xf32> -> vector<8x32xf32>
    %77 = arith.addf %59, %76 : vector<8x32xf32>
    %78 = vector.extract_strided_slice %22 {offsets = [0, 24], sizes = [8, 8], strides = [1, 1]} : vector<8x32xf32> to vector<8x8xf32>
    %79 = vector.extract_strided_slice %15 {offsets = [0, 24], sizes = [8, 8], strides = [1, 1]} : vector<8x32xf32> to vector<8x8xf32>
    %80 = vector.extract_strided_slice %20 {offsets = [0, 24], sizes = [8, 8], strides = [1, 1]} : vector<8x32xf32> to vector<8x8xf32>
    %cst_43 = arith.constant dense<0.000000e+00> : vector<8x8xf32>
    %81 = tpu.matmul %78, %79, %cst_43 {dimension_numbers = #tpu.dot_dimension_numbers<[1], [1], [0], [0], [0, 0, 1, 0], [], []>} : vector<8x8xf32>, vector<8x8xf32>, vector<8x8xf32> -> vector<8x8xf32>
    %cst_44 = arith.constant dense<0xFF800000> : vector<8xf32>
    %82 = vector.multi_reduction <maximumf>, %81, %cst_44 [1] : vector<8x8xf32> to vector<8xf32>
    %83 = vector.shape_cast %82 : vector<8xf32> to vector<8x1xf32>
    %84 = vector.broadcast %83 : vector<8x1xf32> to vector<8x8xf32>
    %85 = arith.subf %81, %84 : vector<8x8xf32>
    %86 = math.exp %85 : vector<8x8xf32>
    %cst_45 = arith.constant dense<0.000000e+00> : vector<8xf32>
    %87 = vector.multi_reduction <add>, %86, %cst_45 [1] : vector<8x8xf32> to vector<8xf32>
    %88 = vector.shape_cast %87 : vector<8xf32> to vector<8x1xf32>
    %cst_46 = arith.constant dense<0.000000e+00> : vector<8x8xf32>
    %89 = tpu.matmul %86, %80, %cst_46 {dimension_numbers = #tpu.dot_dimension_numbers<[1], [0], [0], [1], [0, 0, 1, 1], [], []>} : vector<8x8xf32>, vector<8x8xf32>, vector<8x8xf32> -> vector<8x8xf32>
    %90 = tpu.reciprocal %88 : vector<8x1xf32> -> vector<8x1xf32>
    %91 = vector.broadcast %90 : vector<8x1xf32> to vector<8x8xf32>
    %92 = arith.mulf %89, %91 : vector<8x8xf32>
    %c24 = arith.constant 24 : index
    %c0_47 = arith.constant 0 : index
    %93 = vector.load %arg7[%c24, %c0_47] : memref<32x32xf32, #tpu.memory_space<vmem>>, vector<8x32xf32>
    %cst_48 = arith.constant dense<0.000000e+00> : vector<8x32xf32>
    %94 = tpu.matmul %92, %93, %cst_48 {dimension_numbers = #tpu.dot_dimension_numbers<[1], [0], [0], [1], [0, 0, 1, 1], [], []>} : vector<8x8xf32>, vector<8x32xf32>, vector<8x32xf32> -> vector<8x32xf32>
    %95 = arith.addf %77, %94 : vector<8x32xf32>
    %c0_49 = arith.constant 0 : index
    %c0_50 = arith.constant 0 : index
    %96 = vector.load %arg11[%c0_49, %c0_50] : memref<1x32xf32, #tpu.memory_space<vmem>>, vector<1x32xf32>
    %97 = vector.broadcast %96 : vector<1x32xf32> to vector<8x32xf32>
    %98 = arith.addf %95, %97 : vector<8x32xf32>
    %c0_51 = arith.constant 0 : index
    %c0_52 = arith.constant 0 : index
    %c0_53 = arith.constant 0 : index
    %99 = vector.load %arg12[%c0_51, %c0_52, %c0_53] : memref<1x8x32xf32, #tpu.memory_space<vmem>>, vector<1x8x32xf32>
    %100 = vector.shape_cast %99 : vector<1x8x32xf32> to vector<8x32xf32>
    %101 = vector.shape_cast %98 : vector<8x32xf32> to vector<1x8x32xf32>
    tpu.vector_store %arg12[%c0_51, %c0_52, %c0_53], %101 {strides = array<i32>} : memref<1x8x32xf32, #tpu.memory_space<vmem>>, vector<1x8x32xf32>,
    return
  }
  func.func @transform_0(%arg0: i32) -> (i32, i32, i32) {
    %c0_i32 = arith.constant 0 : i32
    %c0_i32_0 = arith.constant 0 : i32
    %c0_i32_1 = arith.constant 0 : i32
    return %arg0, %c0_i32, %c0_i32_0 : i32, i32, i32
  }
  func.func @transform_1(%arg0: i32) -> (i32, i32, i32) {
    %c0_i32 = arith.constant 0 : i32
    %c0_i32_0 = arith.constant 0 : i32
    %c0_i32_1 = arith.constant 0 : i32
    return %arg0, %c0_i32, %c0_i32_0 : i32, i32, i32
  }
  func.func @transform_2(%arg0: i32) -> (i32, i32, i32) {
    %c0_i32 = arith.constant 0 : i32
    %c0_i32_0 = arith.constant 0 : i32
    %c0_i32_1 = arith.constant 0 : i32
    return %arg0, %c0_i32, %c0_i32_0 : i32, i32, i32
  }
  func.func @transform_3(%arg0: i32) -> (i32, i32) {
    %c0_i32 = arith.constant 0 : i32
    %c0_i32_0 = arith.constant 0 : i32
    %c0_i32_1 = arith.constant 0 : i32
    return %c0_i32, %c0_i32_0 : i32, i32
  }
  func.func @transform_4(%arg0: i32) -> (i32, i32) {
    %c0_i32 = arith.constant 0 : i32
    %c0_i32_0 = arith.constant 0 : i32
    %c0_i32_1 = arith.constant 0 : i32
    return %c0_i32, %c0_i32_0 : i32, i32
  }
  func.func @transform_5(%arg0: i32) -> (i32, i32) {
    %c0_i32 = arith.constant 0 : i32
    %c0_i32_0 = arith.constant 0 : i32
    %c0_i32_1 = arith.constant 0 : i32
    return %c0_i32, %c0_i32_0 : i32, i32
  }
  func.func @transform_6(%arg0: i32) -> (i32, i32) {
    %c0_i32 = arith.constant 0 : i32
    %c0_i32_0 = arith.constant 0 : i32
    %c0_i32_1 = arith.constant 0 : i32
    return %c0_i32, %c0_i32_0 : i32, i32
  }
  func.func @transform_7(%arg0: i32) -> (i32, i32) {
    %c0_i32 = arith.constant 0 : i32
    %c0_i32_0 = arith.constant 0 : i32
    %c0_i32_1 = arith.constant 0 : i32
    return %c0_i32, %c0_i32_0 : i32, i32
  }
  func.func @transform_8(%arg0: i32) -> (i32, i32) {
    %c0_i32 = arith.constant 0 : i32
    %c0_i32_0 = arith.constant 0 : i32
    %c0_i32_1 = arith.constant 0 : i32
    return %c0_i32, %c0_i32_0 : i32, i32
  }
  func.func @transform_9(%arg0: i32) -> (i32, i32) {
    %c0_i32 = arith.constant 0 : i32
    %c0_i32_0 = arith.constant 0 : i32
    %c0_i32_1 = arith.constant 0 : i32
    return %c0_i32, %c0_i32_0 : i32, i32
  }
  func.func @transform_10(%arg0: i32) -> (i32, i32) {
    %c0_i32 = arith.constant 0 : i32
    %c0_i32_0 = arith.constant 0 : i32
    %c0_i32_1 = arith.constant 0 : i32
    return %c0_i32, %c0_i32_0 : i32, i32
  }
  func.func @transform_11(%arg0: i32) -> (i32, i32, i32) {
    %c0_i32 = arith.constant 0 : i32
    %c0_i32_0 = arith.constant 0 : i32
    %c0_i32_1 = arith.constant 0 : i32
    return %arg0, %c0_i32, %c0_i32_0 : i32, i32, i32
  }
}

</mosaic_0001>

<bundles_post_ra>
// kernel: tpu_custom_call.1
= control target key start
LH: loop header
LB: loop body
LE: loop exit
PB: predicated region body
PF: predicated region fallthrough
CT: control target
= control target key end

     0   :  { %s2952_s0 = inlined_call_operand.hbm [shape: f32[2,8,32], index: 0, kind: input, shape index: {}]   ;;  %s2953_s1 = inlined_call_operand.hbm [shape: f32[2,8,32], index: 1, kind: input, shape index: {}]   ;;  %s2954_s2 = inlined_call_operand.hbm [shape: f32[2,8,32], index: 2, kind: input, shape index: {}]   ;;  %s2955_s3 = inlined_call_operand.hbm [shape: f32[32,32], index: 3, kind: input, shape index: {}]   ;;  %s2956_s4 = inlined_call_operand.hbm [shape: f32[32,32], index: 4, kind: input, shape index: {}]   ;;  %s2957_s5 = inlined_call_operand.hbm [shape: f32[32,32], index: 5, kind: input, shape index: {}]   ;;  %s2958_s6 = inlined_call_operand.hbm [shape: f32[32,32], index: 6, kind: input, shape index: {}]   ;;  %s2959_s7 = inlined_call_operand.vmem [shape: f32[1,32], index: 7, kind: input, shape index: {}]   ;;  %s2960_s8 = inlined_call_operand.vmem [shape: f32[1,32], index: 8, kind: input, shape index: {}]   ;;  %s2961_s9 = inlined_call_operand.vmem [shape: f32[1,32], index: 9, kind: input, shape index: {}]   ;;  %s2962_s10 = inlined_call_operand.vmem [shape: f32[1,32], index: 10, kind: input, shape index: {}]   ;;  %s2963_s11 = inlined_call_operand.hbm [shape: f32[2,8,32], index: 11, kind: output, shape index: {}]  }
   0x1   :  { %2984 = sst [smem:[#allocation25_spill]] %s2952_s0 }
   0x2   :  { %2985 = sst [smem:[#allocation26_spill]] %s2953_s1 }
   0x3   :  { %2986 = sst [smem:[#allocation27_spill]] %s2955_s3 }
   0x4   :  { %2987 = sst [smem:[#allocation28_spill]] %s2957_s5 }
   0x5   :  { %2988 = sst [smem:[#allocation29_spill]] %s2962_s10 }
   0x6   :  { %2989 = sst [smem:[#allocation30_spill]] %s2963_s11 }
   0x7   :  { %16 = vsyncpa [#allocation3], 0 }
   0x8   :  { %18 = vsyncpa [#allocation3 + $0x1], 0 }
   0x9   :  { %19 = vsyncpa [#allocation6], 0 }
   0xa   :  { %21 = vsyncpa [#allocation6 + $0x1], 0 }
   0xb   :  { %22 = vsyncpa [#allocation9], 0 }
   0xc   :  { %23 = vsyncpa [#allocation12], 0 }
   0xd   :  { %24 = vsyncpa [#allocation4], 0 }
   0xe   :  { %26 = vsyncpa [#allocation4 + $0x1], 0  ;;  %s2559_s17 = smov 0   ;;  %s2561_s18 = smov 0  }
   0xf   :  { %s2563_s19 = smov 0   ;;  %s2565_s20 = smov 0  }
  0x10 LB: > { %2990 = sst [smem:[#allocation20_spill]] %s2470_s17  ;;  %s2484_s21 = smov [#allocation8]   ;;  %s2482_s20 = sphi %s2565_s20, %s3027_s20   ;;  %s2478_s19 = sphi %s2563_s19, %s3031_s19   ;;  %s2474_s18 = sphi %s2561_s18, %s3030_s18   ;;  %s2470_s17 = sphi %s2559_s17, %s3029_s17  }
  0x11   : > { %2991 = sst [smem:[#allocation21_spill]] %s2482_s20  ;;  %s321_s22 = sshll.u32 %s2484_s21, 4  ;;  %s322_s22 = int_to_ptr.vmem [resolvable:$true] %s321_s22 }
  0x12   : > { %s2580_s23 = sadd.s32 4294967295, %s2482_s20   ;;  %p1918_p0 = scmp.ge.s32.totalorder %s2482_s20, 1 }
  0x13   : > { %p2976_p1 = scmp.eq.s32.totalorder %s2580_s23, 0  ;;  %p309_p2 = scmp.lt.s32.totalorder %s2482_s20, 3 }
  0x14   : > { %s2485_s25 = smov [#allocation11]   ;;  %s2229_s28 = scalar_lea.vmem %s322_s22, 512 }
  0x15   : > { %p2585_p3 = pnand %p1918_p0, %p309_p2  ;;  %s347_s26 = sshll.u32 %s2485_s25, 4  ;;  %s348_s26 = int_to_ptr.vmem [resolvable:$true] %s347_s26 }
  0x16   : > { %p2230_p8 = scmp.ne.s32.totalorder %s322_s22, %s2229_s28  ;;  %p2237_p11 = scmp.lt.s32.totalorder %s322_s22, %s322_s22 }
  0x17   : > { %s2992_s24 = scalar_select %p2585_p3, 1, 0 }
  0x18   : > { %p2122_p5 = pneg %p2585_p3  ;;  %p2238_p12 = scmp.lt.s32.totalorder %s2229_s28, %s2229_s28 }
  0x1a   : > { %p2594_p6 = pnand %p2122_p5, %p2976_p1  ;;  %p2239_p13 = por %p2238_p12, %p2237_p11 }
  0x1c   : > { %s2993_s27 = scalar_select %p2594_p6, 1, 0 }
  0x1d   : > { %p2964_p7 = pneg %p2594_p6 }
  0x1f   : > { %p2232_p9 = pnand %p2230_p8, %p2964_p7 }
  0x21   : > { %p2233_p10 = pneg %p2232_p9 }
  0x23   : > { %p2240_p0 = pnand %p2239_p13, %p2233_p10 }
  0x25   : > { %2243 = shalt.err (!%p2240_p0)
}
  0x26   : > { %s2965_s29 = smov 128   ;;  %s2967_s30 = smov 8  }
  0x27   : > { %s2994_s3 = sld [smem:[#allocation27_spill]]  ;;  %s2255_s14 = scalar_lea.vmem %s348_s26, 512 }
  0x28   : > { %p2256_p2 = scmp.ne.s32.totalorder %s348_s26, %s2255_s14  ;;  %p2263_p9 = scmp.lt.s32.totalorder %s348_s26, %s348_s26 }
  0x29   : > { %p2264_p10 = scmp.lt.s32.totalorder %s2255_s14, %s2255_s14 }
  0x2a   : > { %p2258_p5 = pnand %p2256_p2, %p2964_p7 }
  0x2b   : > { %p2265_p11 = por %p2264_p10, %p2263_p9 }
  0x2c   : > { %p2259_p8 = pneg %p2258_p5 }
  0x2d   : > { %2125 = dma.hbm_to_vmem [thread:$0]  (!%p2594_p6), %s2994_s3, 512, %s322_s22, [#allocation9], %s2965_s29, %s2965_s29, %s2967_s30  }
  0x2e   : > { %p2266_p12 = pnand %p2265_p11, %p2259_p8 }
  0x30   : > { %2269 = shalt.err (!%p2266_p12)
}
  0x31   : > { %s2995_s5 = sld [smem:[#allocation28_spill]]  ;;  %s1917_s21 = sadd.s32 4294967294, %s2482_s20  }
  0x32   : > { %s2624_s22 = sadd.s32 1, %s2482_s20   ;;  %s39_s28 = sadd.s32 1, %s2478_s19 }
  0x33   : > { %2996 = sst [smem:[#allocation22_spill]] %s2624_s22  ;;  %s36_s25 = ssub.s32 %s2482_s20, %s2624_s22 }
  0x34   : > { %p37_p13 = scmp.eq.s32.totalorder %s36_s25, 0  ;;  %p46_p0 = scmp.ne.s32.totalorder %s2478_s19, %s2474_s18 }
  0x35   : > { %p47_p2 = scmp.eq.s32.totalorder %s2482_s20, 0  ;;  %p52_p5 = scmp.ne.s32.totalorder %s2474_s18, %s2470_s17 }
  0x36   : > { %s2635_s12 = scalar_select %p37_p13, %s2478_s19, %s39_s28  }
  0x37   : > { %2131 = dma.hbm_to_vmem [thread:$0]  (!%p2594_p6), %s2995_s5, 512, %s348_s26, [#allocation12], %s2965_s29, %s2965_s29, %s2967_s30  }
  0x38   : > { %2997 = sst [smem:[#allocation23_spill]] %s2635_s12  ;;  %p48_p8 = por %p47_p2, %p46_p0 }
  0x39   : > { %p2639_p9 = por %p2976_p1, %p52_p5  ;;  %p296_p10 = scmp.eq.s32.totalorder %s2580_s23, 1 }
  0x3a   : > { %p302_p11 = scmp.eq.s32.totalorder %s1917_s21, 1  ;;  %p2153_p12 = scmp.lt.s32.totalorder %s2482_s20, 2 }
  0x3b   : > { %s2998_s13 = scalar_select %p2639_p9, 1, 0 }
  0x3c   : > { %s2969_s26 = sand.u32 1, %s2478_s19   ;;  %p2646_p4 = por %p296_p10, %p46_p0 }
  0x3d   : > { %p2650_p7 = por %p302_p11, %p52_p5  ;;  %s2656_s16 = sshll.u32 %s2969_s26, 3 }
  0x3e   : > { %s2999_s14 = scalar_select %p2646_p4, 1, 0 }
  0x3f   : > { %s3000_s15 = scalar_select %p2650_p7, 1, 0 }
  0x40   : > { %s2659_s25 = sshll.u32 %s2482_s20, 7  ;;  %p2661_p13 = pnand %p2153_p12, %p48_p8 }
  0x41   : > { %3001 = sst [smem:[#allocation24_spill]] %s3000_s15  ;;  %s404_s21 = sand.u32 1, %s2482_s20  }
  0x42   : > { %s3003_s1 = sld [smem:[#allocation26_spill]]  ;;  %s408_s26 = scalar_lea.vmem [#allocation5], %s2656_s16 }
  0x43   : > { %s415_s5 = sshll.u32 %s408_s26, 4  ;;  %s2488_s12 = smov [#allocation10]   ;;  %s2673_s5 = int_to_ptr.vmem [resolvable:$true] %s415_s5 }
  0x44   : > { %s334_s22 = sshll.u32 %s2488_s12, 4  ;;  %s2675_s15 = scalar_lea.sflag [#allocation6], %s404_s21  ;;  %s335_s22 = int_to_ptr.vmem [resolvable:$true] %s334_s22 }
  0x45   : > { %p2681_p2 = pneg %p2661_p13 }
  0x47   : > { %s3004_s20 = scalar_select %p2681_p2, 1, 0 }
  0x48   : > { %s2670_s3 = scalar_lea.hbm %s3003_s1, %s2659_s25  ;;  %s2275_s26 = scalar_lea.hbm %s3003_s1, 256 }
  0x49   : > { %s2270_s17 = scalar_lea.hbm %s2670_s3, 128  ;;  %p2276_p10 = scmp.lt.s32.totalorder %s2670_s3, %s3003_s1 }
  0x4a   : > { %p2271_p0 = scmp.ne.s32.totalorder %s2670_s3, %s2270_s17  ;;  %p2277_p11 = scmp.lt.s32.totalorder %s2275_s26, %s2270_s17 }
  0x4c   : > { %p2273_p5 = pnand %p2681_p2, %p2271_p0  ;;  %p2278_p12 = por %p2277_p11, %p2276_p10 }
  0x4e   : > { %p2274_p8 = pneg %p2273_p5 }
  0x50   : > { %p2279_p1 = pnand %p2278_p12, %p2274_p8 }
  0x52   : > { %2282 = shalt.err (!%p2279_p1)
}
  0x53   : > { %s2283_s12 = scalar_lea.vmem %s2673_s5, 128  ;;  %s2489_s21 = smov [#allocation5]  }
  0x54   : > { %p2284_p7 = scmp.ne.s32.totalorder %s2673_s5, %s2283_s12  ;;  %s2288_s29 = sshll.u32 %s2489_s21, 4  ;;  %s2289_s29 = int_to_ptr.vmem [resolvable:$false] %s2288_s29 }
  0x55   : > { %s2290_s30 = scalar_lea.vmem %s2289_s29, 256  ;;  %p2291_p4 = scmp.lt.s32.totalorder %s2673_s5, %s2289_s29 }
  0x56   : > { %p2286_p0 = pnand %p2284_p7, %p2681_p2  ;;  %p2292_p9 = scmp.lt.s32.totalorder %s2290_s30, %s2283_s12 }
  0x58   : > { %p2287_p5 = pneg %p2286_p0  ;;  %p2293_p3 = por %p2292_p9, %p2291_p4 }
  0x5a   : > { %p2294_p6 = pnand %p2293_p3, %p2287_p5 }
  0x5c   : > { %2297 = shalt.err (!%p2294_p6)
}
  0x5d   : > { %2141 = dma.hbm_to_vmem [thread:$0]  (!%p2661_p13), %s2670_s3, 128, %s2673_s5, %s2675_s15  }
  0x5e   : > { %s2309_s10 = scalar_lea.vmem %s335_s22, 512  ;;  %p3005_p7 = scmp.ne.s32.totalorder %s2993_s27, 0 }
  0x5f   : > { %p2310_p1 = scmp.ne.s32.totalorder %s335_s22, %s2309_s10  ;;  %p2317_p12 = scmp.lt.s32.totalorder %s335_s22, %s335_s22 }
  0x60   : > { %p3006_p8 = pneg %p3005_p7  ;;  %p2318_p0 = scmp.lt.s32.totalorder %s2309_s10, %s2309_s10 }
  0x62   : > { %p2312_p10 = pnand %p2310_p1, %p3006_p8  ;;  %p2319_p2 = por %p2318_p0, %p2317_p12 }
  0x64   : > { %p2313_p11 = pneg %p2312_p10 }
  0x66   : > { %p2320_p4 = pnand %p2319_p2, %p2313_p11 }
  0x68   : > { %2323 = shalt.err (!%p2320_p4)
}
  0x69   : > { %s3007_s11 = smov 8   ;;  %s3008_s17 = smov 128  }
  0x6a   : > { %2128 = dma.hbm_to_vmem [thread:$0]  (!%p3005_p7), %s2956_s4, 512, %s335_s22, [#allocation9], %s3008_s17, %s3008_s17, %s3007_s11  }
  0x6b   : > { %s2490_s3 = smov [#allocation13]   ;;  %p3009_p6 = pmov %p3006_p8 }
  0x6c   : > { %s360_s5 = sshll.u32 %s2490_s3, 4  ;;  %s361_s5 = int_to_ptr.vmem [resolvable:$true] %s360_s5 }
  0x6d   : > { %s2335_s21 = scalar_lea.vmem %s361_s5, 512  ;;  %p2343_p5 = scmp.lt.s32.totalorder %s361_s5, %s361_s5 }
  0x6e   : > { %p2336_p3 = scmp.ne.s32.totalorder %s361_s5, %s2335_s21  ;;  %p2344_p1 = scmp.lt.s32.totalorder %s2335_s21, %s2335_s21 }
  0x70   : > { %p2338_p9 = pnand %p2336_p3, %p3009_p6  ;;  %p2345_p8 = por %p2344_p1, %p2343_p5 }
  0x72   : > { %p2339_p2 = pneg %p2338_p9 }
  0x74   : > { %p2346_p10 = pnand %p2345_p8, %p2339_p2 }
  0x76   : > { %2349 = shalt.err (!%p2346_p10)
}
  0x77   : > { %2134 = dma.hbm_to_vmem [thread:$0]  (!%p3005_p7), %s2958_s6, 512, %s361_s5, [#allocation12], %s3008_s17, %s3008_s17, %s3007_s11  }
  0x78   : > { %s3010_s0 = sld [smem:[#allocation25_spill]]  ;;  %s390_s27 = scalar_lea.vmem [#allocation2], %s2656_s16 }
  0x79   : > { %s397_s12 = sshll.u32 %s390_s27, 4  ;;  %s3011_s3 = sand.u32 1, %s2478_s19   ;;  %s398_s12 = int_to_ptr.vmem [resolvable:$true] %s397_s12 }
  0x7a   : > { %s387_s21 = scalar_lea.sflag [#allocation3], %s3011_s3  ;;  %p3012_p12 = scmp.ne.s32.totalorder %s3004_s20, 0 }
  0x7e   : > { %s2730_s26 = scalar_lea.hbm %s3010_s0, %s2659_s25  ;;  %s2355_s17 = scalar_lea.hbm %s3010_s0, 256 }
  0x7f   : > { %s2350_s1 = scalar_lea.hbm %s2730_s26, 128  ;;  %p2356_p7 = scmp.lt.s32.totalorder %s2730_s26, %s3010_s0 }
  0x80   : > { %p2351_p11 = scmp.ne.s32.totalorder %s2730_s26, %s2350_s1  ;;  %p2357_p3 = scmp.lt.s32.totalorder %s2355_s17, %s2350_s1 }
  0x82   : > { %p2353_p0 = pnand %p2351_p11, %p3012_p12  ;;  %p2358_p6 = por %p2357_p3, %p2356_p7 }
  0x84   : > { %p2354_p4 = pneg %p2353_p0 }
  0x86   : > { %p2359_p9 = pnand %p2358_p6, %p2354_p4 }
  0x88   : > { %2362 = shalt.err (!%p2359_p9)
}
  0x89   : > { %s2363_s30 = scalar_lea.vmem %s398_s12, 128  ;;  %s2491_s10 = smov [#allocation2]  }
  0x8a   : > { %p2364_p2 = scmp.ne.s32.totalorder %s398_s12, %s2363_s30  ;;  %s2368_s27 = sshll.u32 %s2491_s10, 4  ;;  %s2369_s27 = int_to_ptr.vmem [resolvable:$false] %s2368_s27 }
  0x8b   : > { %s2370_s3 = scalar_lea.vmem %s2369_s27, 256  ;;  %p2371_p8 = scmp.lt.s32.totalorder %s398_s12, %s2369_s27 }
  0x8c   : > { %p2366_p5 = pnand %p2364_p2, %p3012_p12  ;;  %p2372_p10 = scmp.lt.s32.totalorder %s2370_s3, %s2363_s30 }
  0x8e   : > { %p2367_p1 = pneg %p2366_p5  ;;  %p2373_p11 = por %p2372_p10, %p2371_p8 }
  0x90   : > { %p2374_p0 = pnand %p2373_p11, %p2367_p1 }
  0x92   : > { %2377 = shalt.err (!%p2374_p0)
}
  0x93   : > { %2138 = dma.hbm_to_vmem [thread:$0]  (!%p2661_p13), %s2730_s26, 128, %s398_s12, %s387_s21  }
  0x94   : > { %s431_s11 = scalar_lea.hbm %s2954_s2, %s2659_s25  ;;  %s426_s17 = scalar_lea.vmem [#allocation7], %s2656_s16 }
  0x95   : > { %s433_s5 = sshll.u32 %s426_s17, 4  ;;  %s2378_s29 = scalar_lea.hbm %s431_s11, 128  ;;  %s434_s5 = int_to_ptr.vmem [resolvable:$true] %s433_s5 }
  0x96   : > { %p2379_p4 = scmp.ne.s32.totalorder %s431_s11, %s2378_s29  ;;  %s2383_s27 = scalar_lea.hbm %s2954_s2, 256 }
  0x97   : > { %p2384_p6 = scmp.lt.s32.totalorder %s431_s11, %s2954_s2  ;;  %p2385_p9 = scmp.lt.s32.totalorder %s2383_s27, %s2378_s29 }
  0x98   : > { %p2381_p7 = pnand %p2379_p4, %p3012_p12 }
  0x99   : > { %p2386_p2 = por %p2385_p9, %p2384_p6 }
  0x9a   : > { %p2382_p3 = pneg %p2381_p7 }
  0x9c   : > { %p2387_p5 = pnand %p2386_p2, %p2382_p3 }
  0x9e   : > { %2390 = shalt.err (!%p2387_p5)
}
  0x9f   : > { %s2391_s16 = scalar_lea.vmem %s434_s5, 128  ;;  %s2492_s25 = smov [#allocation7]  }
  0xa0   : > { %p2392_p1 = scmp.ne.s32.totalorder %s434_s5, %s2391_s16  ;;  %s2396_s26 = sshll.u32 %s2492_s25, 4  ;;  %s2397_s26 = int_to_ptr.vmem [resolvable:$false] %s2396_s26 }
  0xa1   : > { %s2398_s12 = scalar_lea.vmem %s2397_s26, 256  ;;  %p2399_p11 = scmp.lt.s32.totalorder %s434_s5, %s2397_s26 }
  0xa2   : > { %p2394_p8 = pnand %p2392_p1, %p3012_p12  ;;  %p2400_p0 = scmp.lt.s32.totalorder %s2398_s12, %s2391_s16 }
  0xa4   : > { %p2395_p10 = pneg %p2394_p8  ;;  %p2401_p4 = por %p2400_p0, %p2399_p11 }
  0xa6   : > { %p2402_p7 = pnand %p2401_p4, %p2395_p10 }
  0xa8   : > { %2405 = shalt.err (!%p2402_p7)
}
  0xa9   : > { %2144 = dma.hbm_to_vmem [thread:$0]  (!%p2661_p13), %s431_s11, 128, %s434_s5, %s2675_s15  }
  0xaa   : > { %p3013_p3 = scmp.ne.s32.totalorder %s2992_s24, 0 }
  0xab   : > { %s2772_s0 = sand.u32 (!%p3013_p3), 1, %s2474_s18   ;;  %p3014_p12 = scmp.ne.s32.totalorder (!%p3013_p3), %s2998_s13, 0 }
  0xac   : > { %442 = sbr.rel (%p3013_p3) target bundleno = 2170 (0x87a), region = 64  ;;  %s2775_s20 = sshll.u32 (!%p3013_p3), %s2772_s0, 3 }
  0xad   : > { %s445_s21 = scalar_lea.sflag (!%p3013_p3), [#allocation3], %s2772_s0  ;;  %s448_s1 = scalar_lea.vmem (!%p3013_p3), [#allocation2], %s2775_s20 }
  0xb1   : > { %2449 = dma.done.wait (%p3014_p12), %s445_s21, 128  }
  0xb2   : > { %2451 = vsyncadd (%p3014_p12), %s445_s21, 4294967168  ;;  %s453_s24 = sand.u32 1, %s2580_s23   ;;  %s457_s28 = scalar_lea.vmem [#allocation5], %s2775_s20 }
  0xb3   : > { %s454_s15 = scalar_lea.sflag [#allocation6], %s453_s24 }
  0xb4   : > { %2453 = dma.done.wait (%p3014_p12), %s454_s15, 256  }
  0xb5   : > { %2455 = vsyncadd (%p3014_p12), %s454_s15, 4294967040  ;;  %s466_s22 = scalar_lea.vmem [#allocation7], %s2775_s20  ;;  %p3015_p13 = scmp.eq.s32.totalorder %s2580_s23, 0 }
  0xb7   : > { %2457 = dma.done.wait (%p3015_p13), [#allocation9], 1024   ;;  %p3016_p6 = pmov %p3015_p13 }
  0xb9   : > { %2459 = vsyncadd (%p3016_p6), [#allocation9], 4294966272  ;;  %p3017_p9 = pmov %p3016_p6 }
  0xba   : > { %p3018_p2 = pmov %p3016_p6 }
  0xbb   : > { %2461 = dma.done.wait (%p3017_p9), [#allocation12], 1024  }
  0xbc   : > { %2463 = vsyncadd (%p3018_p2), [#allocation12], 4294966272  ;;  %v2493_v0 = vmov 0.0   ;;  %vm2494_vm0 = vmmov 0   ;;  %v537_v1 = vld [vmem:[#allocation8 + $0x18] sm:$0xff]  ;;  %v536_v3 = vld [vmem:[#allocation8 + $0x10] sm:$0xff] }
  0xbd   : > { %2005 = vmatprep.subr.mxu0 %v2493_v0  ;;  %2016 = vmatprep.subr.mxu1 %v2493_v0  ;;  %v622_v2 = vld [vmem:[#allocation10 + $0x18] sm:$0xff]  ;;  %v621_v4 = vld [vmem:[#allocation10 + $0x10] sm:$0xff]  ;;  %v535_v5 = vld [vmem:[#allocation8 + $0x8] sm:$0xff]  ;;  %vm545_vm1 = vcmask 261120   ;;  %vm788_vm2 = vcmask 64512   ;;  %s2495_s29 = smov 120  }
  0xbe   : > { %2013 = vmatprep.mubr.msk.f32.mxu0 %vm2494_vm0, %v2493_v0  ;;  %2024 = vmatprep.mubr.msk.f32.mxu1 %vm2494_vm0, %v2493_v0  ;;  %v620_v6 = vld [vmem:[#allocation10 + $0x8] sm:$0xff]  ;;  %v534_v7 = vld [vmem:[#allocation8] sm:$0xff]  ;;  %v531_v9 = vld [vmem:[%s448_s1] sm:$0xff]  ;;  %s2496_s27 = smov 112   ;;  %s2497_s3 = smov 104  }
  0xbf   : > { %2006 = vmatpush3.msra.mxu0 %v537_v1  ;;  %2017 = vmatpush3.msra.mxu1 %v622_v2  ;;  %v619_v8 = vld [vmem:[#allocation10] sm:$0xff]  ;;  %v706_v11 = vld [vmem:[#allocation11 + $0x18] sm:$0xff]  ;;  %v705_v12 = vld [vmem:[#allocation11 + $0x10] sm:$0xff]  ;;  %s3019_s26 = sld [smem:[#allocation29_spill]]  ;;  %s1963_s12 = sshll.u32 %s2580_s23, 7 }
  0xc0   : > { %2007 = vmatprep.subr.mxu0 %v2493_v0  ;;  %2018 = vmatprep.subr.mxu1 %v2493_v0  ;;  %v532_v10 = vld [vmem:[%s457_s28] sm:$0xff]  ;;  %v533_v15 = vld [vmem:[%s466_s22] sm:$0xff]  ;;  %s530_s21 = scalar_lea.vmem [#allocation14], %s2775_s20  ;;  %s3020_s28 = sld [smem:[#allocation30_spill]] }
  0xc1   : > { %2008 = vmatpush3.msra.mxu0 %v536_v3  ;;  %2019 = vmatpush3.msra.mxu1 %v621_v4  ;;  %v704_v13 = vld [vmem:[#allocation11 + $0x8] sm:$0xff]  ;;  %v703_v14 = vld [vmem:[#allocation11] sm:$0xff]  ;;  %v1939_v16 = vld [vmem:[%s2959_s7] ss:$0 sm:$0xff]  ;;  %s1766_s1 = sshll.u32 %s530_s21, 4  ;;  %s1753_s13 = scalar_lea.sflag [#allocation4], %s2772_s0  ;;  %s1767_s1 = int_to_ptr.vmem [resolvable:$true] %s1766_s1 }
  0xc2   : > { %2009 = vmatprep.subr.mxu0 %v2493_v0  ;;  %2020 = vmatprep.subr.mxu1 %v2493_v0  ;;  %v1941_v17 = vld [vmem:[%s2960_s8] ss:$0 sm:$0xff]  ;;  %v949_v46 = vld [vmem:[#allocation13] sm:$0xff]  ;;  %v1116_v49 = vld [vmem:[#allocation13 + $0x8] sm:$0xff]  ;;  %s2406_s11 = scalar_lea.vmem %s1767_s1, 128  ;;  %p3021_p1 = scmp.ne.s32.totalorder %s2999_s14, 0 }
  0xc3   : > { %2010 = vmatpush3.msra.mxu0 %v535_v5  ;;  %2021 = vmatpush3.msra.mxu1 %v620_v6  ;;  %v1943_v25 = vld [vmem:[%s2961_s9] ss:$0 sm:$0xff]  ;;  %p2407_p5 = scmp.ne.s32.totalorder %s1767_s1, %s2406_s11  ;;  %s2498_s17 = smov [#allocation14]  }
  0xc4   : > { %2011 = vmatprep.subr.mxu0 %v2493_v0  ;;  %2022 = vmatprep.subr.mxu1 %v2493_v0  ;;  %s2410_s23 = sshll.u32 %s2498_s17, 4  ;;  %s2411_s23 = int_to_ptr.vmem [resolvable:$false] %s2410_s23 }
  0xc5   : > { %2012 = vmatpush3.msra.mxu0 %v534_v7  ;;  %2023 = vmatpush3.msra.mxu1 %v619_v8  ;;  %p2408_p8 = pnand %p2407_p5, %p3021_p1  ;;  %s2412_s20 = scalar_lea.vmem %s2411_s23, 256 }
  0xc6   : > { %2014 = vmatmul.mubr.msk.f32.vlgmr.msra.gmra.mxu0 %vm545_vm1, %v531_v9  ;;  %2025 = vmatmul.mubr.msk.f32.vlgmr.msra.gmra.mxu1 %vm545_vm1, %v532_v10  ;;  %s1764_s22 = scalar_lea.hbm %s3020_s28, %s1963_s12  ;;  %p2413_p11 = scmp.lt.s32.totalorder %s1767_s1, %s2411_s23 }
  0xc7   : > { %2027 = vmatprep.subr.mxu0 %v2493_v0  ;;  %2035 = vmatprep.mubr.msk.f32.mxu0 %vm2494_vm0, %v2493_v0  ;;  %p2409_p10 = pneg %p2408_p8  ;;  %p2414_p0 = scmp.lt.s32.totalorder %s2412_s20, %s2406_s11 }
  0xc8   : > { %2028 = vmatpush3.msra.mxu0 %v706_v11  ;;  %2038 = vmatprep.subr.mxu1 %v2493_v0 }
  0xc9   : > { %2029 = vmatprep.subr.mxu0 %v2493_v0  ;;  %2040 = vmatprep.mubr.msk.f32.mxu1 %vm2494_vm0, %v2493_v0  ;;  %p2415_p4 = por %p2414_p0, %p2413_p11 }
  0xca   : > { %2030 = vmatpush3.msra.mxu0 %v705_v12 }
  0xcb   : > { %2031 = vmatprep.subr.mxu0 %v2493_v0  ;;  %p2416_p7 = pnand %p2415_p4, %p2409_p10 }
  0xcc   : > { %2032 = vmatpush3.msra.mxu0 %v704_v13 }
  0xcd   : > { %2033 = vmatprep.subr.mxu0 %v2493_v0 }
  0xce   : > { %2034 = vmatpush3.msra.mxu0 %v703_v14  ;;  %v1428_v14 = vld [vmem:[#allocation13 + $0x10] sm:$0xff] }
  0xcf   : > { %2036 = vmatmul.mubr.msk.f32.vlgmr.msra.gmra.mxu0 %vm545_vm1, %v533_v15  ;;  %2048 = vmatprep.subr.mxu0 %v2493_v0 }
  0xd0   : > { %2050 = vmatprep.mubr.msk.f32.mxu0 %vm2494_vm0, %v2493_v0 }
 0x186   : > { %v615_v18 = vpop.f32.mrf.mxu0  ;;  %v699_v19 = vpop.f32.mrf.mxu1 }
 0x187   : > { %v616_v20 = vadd.f32 %v1939_v16, %v615_v18  ;;  %v2837_v21 = vadd.f32 %v1941_v17, %v699_v19 }
 0x188   : > { %v2015_v22 = vpop.f32.mrf.mxu0  ;;  %v2026_v23 = vpop.f32.mrf.mxu1 }
 0x189   : > { %v787_v24 = vmul.f32 0.35355338, %v616_v20  ;;  %952 = vrot.lane.b32.xlu0 %v2837_v21, %s2495_s29  ;;  %2039 = vmatpush3.xpose.msk.msra.mxu1 %vm788_vm2, %v2837_v21 }
 0x18a   : > { %2043 = vmatprep.subr.mxu1 %v2493_v0 }
 0x18c   : > { %2041 = vmatmul.mubr.msk.f32.vlgmr.msra.gmra.mxu1 %vm788_vm2, %v787_v24 }
 0x18d   : > { %950 = vrot.lane.b32.xlu0 %v787_v24, %s2495_s29  ;;  %2045 = vmatprep.mubr.msk.f32.mxu1 %vm2494_vm0, %v2493_v0 }
 0x18f   : > { %v783_v26 = vpop.f32.mrf.mxu0 }
 0x190   : > { %v2849_v27 = vadd.f32 %v1943_v25, %v783_v26 }
 0x191   : > { %v2037_v28 = vpop.f32.mrf.mxu0 }
 0x192   : > { %1038 = vrot.lane.b32.xlu0 %v2849_v27, %s2495_s29  ;;  %2044 = vmatpush3.msra.mxu1 %v2849_v27 }
 0x193   : > { %2053 = vmatprep.subr.mxu1 %v2493_v0 }
 0x196   : > { %1265 = vrot.lane.b32.xlu0 %v2837_v21, %s2496_s27 }
 0x1fb   : > { %v953_v29 = vpop.permute.xlu0 %952 }
 0x1fc   : > { %2049 = vmatpush3.xpose.msk.msra.mxu0 %vm788_vm2, %v953_v29  ;;  %v1668_v29 = vld [vmem:[#allocation13 + $0x18] sm:$0xff] }
 0x1fd   : > { %2058 = vmatprep.subr.mxu0 %v2493_v0 }
 0x1ff   : > { %v951_v30 = vpop.permute.xlu0 %950 }
 0x200   : > { %2051 = vmatmul.mubr.msk.f32.vlgmr.msra.gmra.mxu0 %vm788_vm2, %v951_v30 }
 0x201   : > { %2060 = vmatprep.mubr.msk.f32.mxu0 %vm2494_vm0, %v2493_v0  ;;  %2059 = vmatpush3.msra.mxu0 %v1116_v49 }
 0x202   : > { %2068 = vmatprep.subr.mxu0 %v2493_v0 }
 0x204   : > { %v1039_v41 = vpop.permute.xlu0 %1038 }
 0x208   : > { %v1266_v50 = vpop.permute.xlu0 %1265 }
 0x24c   : > { %v861_v31 = vpop.f32.mrf.mxu1 }
 0x24d   : > { %v865_v32 = vsel %vm788_vm2, %v861_v31, -inf }
 0x24e   : > { %866 = vmax.xlane.f32.xlu1 %v865_v32  ;;  %v2042_v33 = vpop.f32.mrf.mxu1 }
 0x2c0   : > { %v1024_v34 = vpop.f32.mrf.mxu0 }
 0x2c1   : > { %v1028_v35 = vsel %vm788_vm2, %v1024_v34, -inf }
 0x2c2   : > { %1029 = vmax.xlane.f32.xlu1 %v1028_v35  ;;  %v2052_v36 = vpop.f32.mrf.mxu0 }
 0x2d7   : > { %v867_v37 = vpop.xlane.xlu1 %866 }
 0x2d8   : > { %v868_v38 = vsub.f32 %v861_v31, %v867_v37 }
 0x2da   : > { %v869_v39 = vmul.f32 1.442695, %v868_v38 }
 0x2dc   : > { %2202 = vpow2.f32 %v869_v39  ;;  %v1961_v39 = vld [vmem:[%s3019_s26] ss:$0 sm:$0xff] }
 0x2e9   : > { %v2203_v40 = vpop.eup %2202 }
 0x2ea   : > { %2046 = vmatmul.mubr.msk.f32.vlgmr.msra.gmra.mxu1 %vm788_vm2, %v2203_v40  ;;  %v871_v42 = vsel %vm788_vm2, %v2203_v40, 0.0 }
 0x2eb   : > { %872 = vadd.xlane.f32.xlu0 %v871_v42  ;;  %2054 = vmatpush3.msra.mxu1 %v1039_v41 }
 0x2ec   : > { %2055 = vmatprep.mubr.msk.f32.mxu1 %vm2494_vm0, %v2493_v0  ;;  %2063 = vmatprep.subr.mxu1 %v2493_v0 }
 0x301   : > { %1350 = vrot.lane.b32.xlu0 %v2849_v27, %s2496_s27 }
 0x305   : > { %1503 = vrot.lane.b32.xlu0 %v787_v24, %s2497_s3 }
 0x34b   : > { %v1030_v43 = vpop.xlane.xlu1 %1029 }
 0x34c   : > { %v1031_v44 = vsub.f32 %v1024_v34, %v1030_v43 }
 0x34e   : > { %v1032_v45 = vmul.f32 1.442695, %v1031_v44 }
 0x350   : > { %2204 = vpow2.f32 %v1032_v45 }
 0x35d   : > { %v2205_v47 = vpop.eup %2204 }
 0x35e   : > { %2056 = vmatmul.mubr.msk.f32.vlgmr.msra.gmra.mxu1 %vm788_vm2, %v2205_v47  ;;  %v1034_v48 = vsel %vm788_vm2, %v2205_v47, 0.0 }
 0x35f   : > { %1035 = vadd.xlane.f32.xlu1 %v1034_v48  ;;  %2064 = vmatpush3.msra.mxu1 %v949_v46 }
 0x360   : > { %2065 = vmatprep.mubr.msk.f32.mxu1 %vm2494_vm0, %v2493_v0  ;;  %2073 = vmatprep.subr.mxu1 %v2493_v0 }
 0x370   : > { %1263 = vrot.lane.b32.xlu1 %v787_v24, %s2496_s27 }
 0x374   : > { %v873_v51 = vpop.xlane.xlu0 %872 }
 0x375   : > { %2206 = vrcp.f32 %v873_v51 }
 0x378   : > { %v1351_v56 = vpop.permute.xlu0 %1350 }
 0x37c   : > { %v1504_v13 = vpop.permute.xlu0 %1503 }
 0x382   : > { %v2207_v52 = vpop.eup %2206 }
 0x3aa   : > { %v943_v53 = vpop.f32.mrf.mxu1 }
 0x3ab   : > { %v948_v54 = vmul.f32 %v2207_v52, %v943_v53 }
 0x3ac   : > { %v2047_v55 = vpop.f32.mrf.mxu1 }
 0x3ad   : > { %2066 = vmatmul.mubr.msk.f32.vlgmr.msra.gmra.mxu1 %vm788_vm2, %v948_v54 }
 0x3ae   : > { %2074 = vmatpush3.msra.mxu1 %v1351_v56  ;;  %2075 = vmatprep.mubr.msk.f32.mxu1 %vm2494_vm0, %v2493_v0 }
 0x3af   : > { %2083 = vmatprep.subr.mxu1 %v2493_v0 }
 0x3e8   : > { %v1036_v57 = vpop.xlane.xlu1 %1035 }
 0x3e9   : > { %2208 = vrcp.f32 %v1036_v57 }
 0x3ec   : > { %v1264_v62 = vpop.permute.xlu1 %1263 }
 0x3f6   : > { %v2209_v58 = vpop.eup %2208 }
 0x41e   : > { %v1110_v59 = vpop.f32.mrf.mxu1 }
 0x41f   : > { %v1115_v60 = vmul.f32 %v2209_v58, %v1110_v59 }
 0x420   : > { %v2057_v61 = vpop.f32.mrf.mxu1 }
 0x421   : > { %2061 = vmatmul.mubr.msk.f32.vlgmr.msra.gmra.mxu0 %vm788_vm2, %v1115_v60 }
 0x422   : > { %2069 = vmatpush3.xpose.msk.msra.mxu0 %vm788_vm2, %v1266_v50  ;;  %2070 = vmatprep.mubr.msk.f32.mxu0 %vm2494_vm0, %v2493_v0 }
 0x423   : > { %2078 = vmatprep.subr.mxu0 %v2493_v0 }
 0x425   : > { %2071 = vmatmul.mubr.msk.f32.vlgmr.msra.gmra.mxu0 %vm788_vm2, %v1264_v62 }
 0x426   : > { %2080 = vmatprep.mubr.msk.f32.mxu0 %vm2494_vm0, %v2493_v0  ;;  %2079 = vmatpush3.msra.mxu0 %v1428_v14 }
 0x427   : > { %2088 = vmatprep.subr.mxu0 %v2493_v0 }
 0x46d   : > { %v1259_v63 = vpop.f32.mrf.mxu1 }
 0x46f   : > { %v2067_v1 = vpop.f32.mrf.mxu1 }
 0x4e1   : > { %v1186_v2 = vpop.f32.mrf.mxu0 }
 0x4e2   : > { %v1260_v30 = vadd.f32 %v1259_v63, %v1186_v2 }
 0x4e3   : > { %v2062_v3 = vpop.f32.mrf.mxu0 }
 0x4e5   : > { %v1337_v4 = vpop.f32.mrf.mxu0 }
 0x4e6   : > { %v1341_v5 = vsel %vm788_vm2, %v1337_v4, -inf }
 0x4e7   : > { %1342 = vmax.xlane.f32.xlu1 %v1341_v5  ;;  %v2072_v6 = vpop.f32.mrf.mxu0 }
 0x4f8   : > { %1505 = vrot.lane.b32.xlu1 %v2837_v21, %s2497_s3 }
 0x570   : > { %v1343_v7 = vpop.xlane.xlu1 %1342 }
 0x571   : > { %v1344_v8 = vsub.f32 %v1337_v4, %v1343_v7 }
 0x573   : > { %v1345_v9 = vmul.f32 1.442695, %v1344_v8 }
 0x574   : > { %v1506_v11 = vpop.permute.xlu1 %1505 }
 0x575   : > { %2210 = vpow2.f32 %v1345_v9 }
 0x582   : > { %v2211_v10 = vpop.eup %2210 }
 0x583   : > { %2076 = vmatmul.mubr.msk.f32.vlgmr.msra.gmra.mxu1 %vm788_vm2, %v2211_v10  ;;  %v1347_v12 = vsel %vm788_vm2, %v2211_v10, 0.0 }
 0x584   : > { %2084 = vmatpush3.xpose.msk.msra.mxu1 %vm788_vm2, %v1506_v11  ;;  %1348 = vadd.xlane.f32.xlu0 %v1347_v12 }
 0x585   : > { %2085 = vmatprep.mubr.msk.f32.mxu1 %vm2494_vm0, %v2493_v0  ;;  %2093 = vmatprep.subr.mxu1 %v2493_v0 }
 0x587   : > { %2086 = vmatmul.mubr.msk.f32.vlgmr.msra.gmra.mxu1 %vm788_vm2, %v1504_v13 }
 0x588   : > { %2095 = vmatprep.mubr.msk.f32.mxu1 %vm2494_vm0, %v2493_v0  ;;  %2094 = vmatpush3.msra.mxu1 %v1668_v29 }
 0x59a   : > { %1590 = vrot.lane.b32.xlu0 %v2849_v27, %s2497_s3 }
 0x60d   : > { %v1349_v15 = vpop.xlane.xlu0 %1348 }
 0x60e   : > { %2212 = vrcp.f32 %v1349_v15 }
 0x611   : > { %v1591_v20 = vpop.permute.xlu0 %1590 }
 0x61b   : > { %v2213_v16 = vpop.eup %2212 }
 0x643   : > { %v1422_v17 = vpop.f32.mrf.mxu1 }
 0x644   : > { %v1427_v18 = vmul.f32 %v2213_v16, %v1422_v17 }
 0x645   : > { %v2077_v19 = vpop.f32.mrf.mxu1 }
 0x646   : > { %2081 = vmatmul.mubr.msk.f32.vlgmr.msra.gmra.mxu0 %vm788_vm2, %v1427_v18 }
 0x647   : > { %2089 = vmatpush3.msra.mxu0 %v1591_v20  ;;  %v1577_v21 = vpop.f32.mrf.mxu1  ;;  %2090 = vmatprep.mubr.msk.f32.mxu0 %vm2494_vm0, %v2493_v0 }
 0x648   : > { %v1581_v22 = vsel %vm788_vm2, %v1577_v21, -inf }
 0x649   : > { %1582 = vmax.xlane.f32.xlu1 %v1581_v22  ;;  %v2087_v23 = vpop.f32.mrf.mxu1 }
 0x6d2   : > { %v1583_v24 = vpop.xlane.xlu1 %1582 }
 0x6d3   : > { %v1584_v25 = vsub.f32 %v1577_v21, %v1583_v24 }
 0x6d5   : > { %v1585_v26 = vmul.f32 1.442695, %v1584_v25 }
 0x6d7   : > { %2214 = vpow2.f32 %v1585_v26 }
 0x6e4   : > { %v2215_v27 = vpop.eup %2214 }
 0x6e5   : > { %2091 = vmatmul.mubr.msk.f32.vlgmr.msra.gmra.mxu0 %vm788_vm2, %v2215_v27  ;;  %v1587_v28 = vsel %vm788_vm2, %v2215_v27, 0.0 }
 0x6e6   : > { %1588 = vadd.xlane.f32.xlu1 %v1587_v28 }
 0x706   : > { %v1498_v0 = vpop.f32.mrf.mxu0 }
 0x707   : > { %v1502_v31 = vadd.f32 %v1498_v0, %v1260_v30 }
 0x708   : > { %v2082_v32 = vpop.f32.mrf.mxu0 }
 0x76f   : > { %v1589_v33 = vpop.xlane.xlu1 %1588 }
 0x770   : > { %2216 = vrcp.f32 %v1589_v33 }
 0x77d   : > { %v2217_v34 = vpop.eup %2216 }
 0x7a5   : > { %v1662_v35 = vpop.f32.mrf.mxu0 }
 0x7a6   : > { %v1667_v36 = vmul.f32 %v2217_v34, %v1662_v35 }
 0x7a7   : > { %v2092_v37 = vpop.f32.mrf.mxu0 }
 0x7a8   : > { %2096 = vmatmul.mubr.msk.f32.vlgmr.msra.gmra.mxu1 %vm788_vm2, %v1667_v36 }
 0x868   : > { %v1738_v38 = vpop.f32.mrf.mxu1 }
 0x869   : > { %v1742_v40 = vadd.f32 %v1738_v38, %v1502_v31 }
 0x86a   : > { %v2097_v41 = vpop.f32.mrf.mxu1 }
 0x86b   : > { %v1750_v42 = vadd.f32 %v1961_v39, %v1742_v40 }
 0x86d   : > { %1751 = vst.msk [vmem:[%s530_s21] sm:$0xff] %vm545_vm1, %v1750_v42 }
 0x86e   : > { %2419 = shalt.err (!%p2416_p7)
}
 0x86f   : > { %s2420_s5 = scalar_lea.hbm %s1764_s22, 128  ;;  %s2424_s30 = scalar_lea.hbm %s3020_s28, 256 }
 0x870   : > { %p2421_p3 = scmp.ne.s32.totalorder %s1764_s22, %s2420_s5  ;;  %p2425_p6 = scmp.lt.s32.totalorder %s1764_s22, %s3020_s28 }
 0x871   : > { %p2426_p9 = scmp.lt.s32.totalorder %s2424_s30, %s2420_s5 }
 0x872   : > { %p2422_p12 = pnand %p2421_p3, %p3021_p1 }
 0x873   : > { %p2427_p2 = por %p2426_p9, %p2425_p6 }
 0x874   : > { %p2423_p13 = pneg %p2422_p12 }
 0x876   : > { %p2428_p5 = pnand %p2427_p2, %p2423_p13 }
 0x878   : > { %2431 = shalt.err (!%p2428_p5)
}
 0x879   : > { %2120 = dma.vmem_to_hbm [thread:$0]  (%p3021_p1), %s1767_s1, 128, %s1764_s22, %s1753_s13  }
 0x87a PF: > { %s3022_s3 = sld [smem:[#allocation20_spill]] }
 0x87b   : > { %s3023_s16 = sld [smem:[#allocation24_spill]] }
 0x87c   : > { %s3024_s25 = sld [smem:[#allocation21_spill]] }
 0x880   : > { %s1778_s26 = sand.u32 1, %s3022_s3  }
 0x881   : > { %p3025_p8 = scmp.ne.s32.totalorder %s3023_s16, 0  ;;  %s1779_s12 = scalar_lea.sflag [#allocation4], %s1778_s26 }
 0x882   : > { %p3026_p10 = scmp.ge.s32.totalorder %s3024_s25, 2 }
 0x884   : > { %p2146_p11 = pnand %p3026_p10, %p3025_p8 }
 0x886   : > { %p2147_p0 = pneg %p2146_p11 }
 0x888   : > { %2465 = dma.done.wait (%p2147_p0), %s1779_s12, 128  }
 0x889   : > { %2467 = vsyncadd (%p2147_p0), %s1779_s12, 4294967168  ;;  %s3027_s20 = sld [smem:[#allocation22_spill]]  ;;  %s3029_s17 = smov %s2474_s18 }
 0x88a   : > { %s3028_s21 = sld [smem:[#allocation23_spill]]  ;;  %s3030_s18 = smov %s2478_s19 }
 0x88f   : > { %p29_p4 = scmp.ge.s32.totalorder %s3027_s20, 4  }
 0x890   : > { %s3031_s19 = smov %s3028_s21 }
 0x891   :  { %31 = sbr.rel (!%p29_p4) target bundleno = 16 (0x10), region = 149 }
 0x896   :  { %1784 = vsyncpa [#allocation3], 1 }
 0x897   :  { %1786 = vsyncpa [#allocation3 + $0x1], 1 }
 0x898   :  { %1787 = vsyncpa [#allocation6], 1 }
 0x899   :  { %1789 = vsyncpa [#allocation6 + $0x1], 1 }
 0x89a   :  { %1790 = vsyncpa [#allocation9], 1 }
 0x89b   :  { %1791 = vsyncpa [#allocation12], 1 }
 0x89c   :  { %1792 = vsyncpa [#allocation4], 1 }
 0x89d   :  { %1794 = vsyncpa [#allocation4 + $0x1], 1 }

</bundles_post_ra>
